<compile_context>
chip_gen: v7x
topology: tpu7x:2x2x1
jax: 0.10.0
libtpu: 0.0.40
codegen_flags: <defaults>
</compile_context>

<pallas_src>
import functools

import numpy as np
import jax
import jax.numpy as jnp
from jax.experimental import pallas as pl
from jax.experimental.pallas import tpu as pltpu

LEAKY_SLOPE = 0.2
BN_EPS = 1e-5
LANES = 128


def _round_up(v, m):
    return (v + m - 1) // m * m


def _leaky(x):
    return jnp.where(x >= 0, x, LEAKY_SLOPE * x)


def _bn_rows(a, m_real):
    """Train-mode BatchNorm over the first `m_real` rows (== over N,H,W), per
    channel.  Two-pass stats (robust to cancellation); biased variance like
    PyTorch training mode.  Normalization is applied to ALL rows (pad rows are
    never consumed downstream)."""
    stats = a[:m_real]
    mean = jnp.mean(stats, axis=0, keepdims=True)
    var = jnp.mean(jnp.square(stats - mean), axis=0, keepdims=True)
    return (a - mean) * jax.lax.rsqrt(var + BN_EPS)


# ----------------------------- Pallas kernel --------------------------------
def _dmn_fused_kernel(p2_ref, w1_ref, b1_ref, w2_ref, w3_ref, w4_ref, b4_ref,
                      q_ref, h2_ref, g3_ref, *, n, m2, c2, n_taps):
    # ---- layer 1: all 16 conv2-taps' conv1 outputs in ONE block-diag matmul --
    #   (M2p, 256) x (256, 128) -> rows = (conv2 position, image),
    #   lanes = (conv2 tap, conv1 channel)  == packed-K im2col operand of conv2.
    a1 = jnp.dot(p2_ref[...], w1_ref[...], preferred_element_type=jnp.float32)
    a1 = _leaky(a1 + b1_ref[...])

    # ---- layer 2: packed-K conv2 (bias cancels under train-mode BN) ---------
    a2 = jnp.dot(a1, w2_ref[...], preferred_element_type=jnp.float32)  # (M2p, c2)
    h2_ref[...] = _leaky(_bn_rows(a2, m2))

    # ---- layer 3: lane-pack the 16 conv3 taps, then ONE matmul --------------
    # Row ordering puts conv3's 16 input positions first, each as a contiguous
    # n-row block, so the "gather" is 16 tiny static VMEM copies.
    g3_ref[...] = jnp.zeros_like(g3_ref)
    for t in range(n_taps):
        g3_ref[0:n, t * c2:(t + 1) * c2] = h2_ref[t * n:(t + 1) * n, :]
    a3 = jnp.dot(g3_ref[...], w3_ref[...], preferred_element_type=jnp.float32)
    h3 = _leaky(_bn_rows(a3, n))                                        # (Np, c3)

    # ---- layer 4: 1x1 conv, key_dim padded to 128 -> lane-dense store -------
    q = jnp.dot(h3, w4_ref[...], preferred_element_type=jnp.float32)
    q_ref[...] = _leaky(q + b4_ref[...])                                # (Np, 128)


# ------------------------------ host-side prep -------------------------------
def prepare_dmn(params, input_hw=(28, 28), batch=2):
    """Forward-invariant preprocessing (weights -> packed matmul operands,
    double-im2col gather indices).  Everything here is O(batch) or O(1)."""
    H, W = input_hw
    c1 = params["conv1_w"].shape[0]          # f_dim
    c2 = params["conv2_w"].shape[0]          # 2*f_dim
    c3 = params["conv3_w"].shape[0]          # 4*f_dim
    key_dim = params["conv4_w"].shape[0]
    assert key_dim <= LANES
    k, s = 4, 2
    oh1, ow1 = (H - k) // s + 1, (W - k) // s + 1        # 13, 13
    oh2, ow2 = (oh1 - k) // s + 1, (ow1 - k) // s + 1    # 5, 5
    oh3, ow3 = (oh2 - k) // s + 1, (ow2 - k) // s + 1    # 1, 1
    assert (oh3, ow3) == (1, 1), "kernel specialised to 28x28-style geometry"

    # conv2-output positions; the 16 positions conv3 reads are placed first so
    # conv3's im2col is 16 contiguous row blocks of the conv2 activation.
    taps3 = [(kh, kw) for kh in range(k) for kw in range(k)]
    rest = [(i, j) for i in range(oh2) for j in range(ow2) if (i, j) not in taps3]
    pos_order = taps3 + rest
    npos = len(pos_order)                    # 25
    n_taps = k * k                           # 16
    patch = k * k                            # conv1 4x4 patch (Cin = 1)

    # double-im2col gather indices into the flat HxW image:
    #   sp[p, (kh2*4+kw2)*16 + kh1*4+kw1] = flat index of the input pixel feeding
    #   conv1 tap (kh1,kw1) of conv2 tap (kh2,kw2) at conv2 position pos_order[p].
    sp = np.empty((npos, n_taps * patch), np.int32)
    for p, (oh, ow) in enumerate(pos_order):
        for kh2 in range(k):
            for kw2 in range(k):
                for kh1 in range(k):
                    for kw1 in range(k):
                        col = (kh2 * k + kw2) * patch + kh1 * k + kw1
                        r = s * (s * oh + kh2) + kh1
                        c = s * (s * ow + kw2) + kw1
                        sp[p, col] = r * W + c

    # conv1 weight as a block-diagonal (256, 16*c1) matrix: one matmul computes
    # conv1 for all 16 conv2-taps and lands it in conv2's packed-K layout.
    w1m = jnp.transpose(params["conv1_w"], (2, 3, 1, 0)).reshape(patch, c1)
    k2 = n_taps * c1                         # 128 for f_dim = 8
    w1b = jnp.zeros((n_taps * patch, k2), jnp.float32)
    for t in range(n_taps):
        w1b = w1b.at[t * patch:(t + 1) * patch, t * c1:(t + 1) * c1].set(w1m)
    b1t = jnp.tile(params["conv1_b"].reshape(1, c1), (1, n_taps))      # (1, k2)

    # packed-K conv2 / conv3 weights (their biases cancel under train-mode BN).
    w2p = jnp.transpose(params["conv2_w"], (2, 3, 1, 0)).reshape(k2, c2)
    w3p = jnp.transpose(params["conv3_w"], (2, 3, 1, 0)).reshape(n_taps * c2, c3)
    # conv4 1x1: (c3, key_dim) padded to 128 output lanes for a lane-dense store.
    w4p = jnp.zeros((c3, LANES), jnp.float32).at[:, :key_dim].set(
        params["conv4_w"].reshape(key_dim, c3).T)
    b4t = jnp.zeros((1, LANES), jnp.float32).at[0, :key_dim].set(params["conv4_b"])

    m2 = npos * batch
    dims = dict(batch=batch, input_hw=input_hw, npos=npos, n_taps=n_taps,
                patch=patch, k2=k2, c2=c2, c3=c3, key_dim=key_dim,
                m2=m2, m2p=_round_up(m2, 8), npad=max(8, _round_up(batch, 8)))
    return dict(sp_idx=jnp.asarray(sp), w1b=w1b, b1t=b1t, w2p=w2p, w3p=w3p,
                w4p=w4p, b4t=b4t, dims=dims)


# ------------------------------ forward pass ----------------------------------
def dmn_forward(x_nchw, prep):
    d = prep["dims"]
    n = d["batch"]
    if x_nchw.shape[0] != n:
        raise ValueError(f"batch {x_nchw.shape[0]} != prepared batch {n}")
    H, W = d["input_hw"]
    cols = d["n_taps"] * d["patch"]                       # 256

    # double im2col of the raw input: rows ordered (conv2 position, image).
    x2 = x_nchw.reshape(n, H * W).astype(jnp.float32)     # Cin == 1
    p = jnp.take(x2, prep["sp_idx"].reshape(-1), axis=1)
    p = p.reshape(n, d["npos"], cols)
    p = jnp.transpose(p, (1, 0, 2)).reshape(d["npos"] * n, cols)
    p2 = jnp.zeros((d["m2p"], cols), jnp.float32).at[:d["npos"] * n].set(p)

    kernel = functools.partial(_dmn_fused_kernel, n=n, m2=d["m2"],
                               c2=d["c2"], n_taps=d["n_taps"])

    flops = 2 * (d["m2p"] * cols * d["k2"]                # layer 1
                 + d["m2p"] * d["k2"] * d["c2"]           # layer 2
                 + d["npad"] * d["n_taps"] * d["c2"] * d["c3"]   # layer 3
                 + d["npad"] * d["c3"] * LANES)           # layer 4
    bytes_acc = 4 * (p2.size + prep["w1b"].size + prep["b1t"].size
                     + prep["w2p"].size + prep["w3p"].size + prep["w4p"].size
                     + prep["b4t"].size + d["npad"] * LANES)

    q_pad = pl.pallas_call(
        kernel,
        out_shape=jax.ShapeDtypeStruct((d["npad"], LANES), jnp.float32),
        in_specs=[pl.BlockSpec(memory_space=pltpu.MemorySpace.VMEM)] * 7,
        out_specs=pl.BlockSpec(memory_space=pltpu.MemorySpace.VMEM),
        scratch_shapes=[
            pltpu.VMEM((d["m2p"], d["c2"]), jnp.float32),            # h2
            pltpu.VMEM((d["npad"], d["n_taps"] * d["c2"]), jnp.float32),  # g3
        ],
        compiler_params=pltpu.CompilerParams(vmem_limit_bytes=16 * 1024 * 1024),
        cost_estimate=pl.CostEstimate(flops=int(flops), transcendentals=64,
                                      bytes_accessed=int(bytes_acc)),
    )(p2, prep["w1b"], prep["b1t"], prep["w2p"], prep["w3p"],
      prep["w4p"], prep["b4t"])

    # PyTorch: q.view(N, -1) with 1x1 spatial == (N, key_dim)
    return q_pad[:n, :d["key_dim"]]


# --------------------------- pure-JAX reference ------------------------------
def dmn_reference(x_nchw, params):
    prec = jax.lax.Precision.HIGHEST

    def conv(h, w, b, s):
        out = jax.lax.conv_general_dilated(
            h, w, window_strides=(s, s), padding="VALID",
            dimension_numbers=("NCHW", "OIHW", "NCHW"), precision=prec)
        return out + b[None, :, None, None]

    def bn(h):
        mean = jnp.mean(h, axis=(0, 2, 3), keepdims=True)
        var = jnp.mean(jnp.square(h - mean), axis=(0, 2, 3), keepdims=True)
        return (h - mean) / jnp.sqrt(var + BN_EPS)

    h = _leaky(conv(x_nchw, params["conv1_w"], params["conv1_b"], 2))
    h = _leaky(bn(conv(h, params["conv2_w"], params["conv2_b"], 2)))
    h = _leaky(bn(conv(h, params["conv3_w"], params["conv3_b"], 2)))
    q = _leaky(conv(h, params["conv4_w"], params["conv4_b"], 1))
    return q.reshape(q.shape[0], -1)


# --------------------------- parameter init ----------------------------------
def init_params(key, f_dim, key_dim):
    """normal_init(mean=0, std=0.02) for conv weights, zero biases.
    BatchNorm gamma=1 / beta=0 (defaults) are folded into the kernel."""
    k1, k2, k3, k4 = jax.random.split(key, 4)

    def conv_w(k, cout, cin, kh, kw):
        return 0.02 * jax.random.normal(k, (cout, cin, kh, kw), jnp.float32)

    return {
        "conv1_w": conv_w(k1, f_dim, 1, 4, 4),
        "conv1_b": jnp.zeros((f_dim,), jnp.float32),
        "conv2_w": conv_w(k2, 2 * f_dim, f_dim, 4, 4),
        "conv2_b": jnp.zeros((2 * f_dim,), jnp.float32),
        "conv3_w": conv_w(k3, 4 * f_dim, 2 * f_dim, 4, 4),
        "conv3_b": jnp.zeros((4 * f_dim,), jnp.float32),
        "conv4_w": conv_w(k4, key_dim, 4 * f_dim, 1, 1),
        "conv4_b": jnp.zeros((key_dim,), jnp.float32),
    }


if __name__ == "__main__":
    f_dim, fc_dim, key_dim = 8, 32, 16   # fc_dim is unused by forward()
    key = jax.random.PRNGKey(0)
    pkey, xkey = jax.random.split(key)

    params = init_params(pkey, f_dim, key_dim)
    # 28x28 single-channel images: 28 -> 13 -> 5 -> 1, so q: (N, key_dim)
    x = jax.random.normal(xkey, (2, 1, 28, 28), jnp.float32)

    prep = prepare_dmn(params, input_hw=(28, 28), batch=2)
    fwd = jax.jit(functools.partial(dmn_forward, prep=prep))
    q = jax.block_until_ready(fwd(x))

    q_ref = dmn_reference(x, params)
    assert q.shape == (2, key_dim), q.shape
    rel_err = float(jnp.max(jnp.abs(q - q_ref)) /
                    (jnp.max(jnp.abs(q_ref)) + 1e-12))
    assert rel_err < 1e-3, rel_err

    print("KERNEL_OK")
</pallas_src>

<mosaic_0001>
module attributes {stable_mosaic.version = 11 : i64} {
  func.func @_dmn_fused_kernel(%arg0: memref<56x256xf32, #tpu.memory_space<vmem>>, %arg1: memref<256x128xf32, #tpu.memory_space<vmem>>, %arg2: memref<1x128xf32, #tpu.memory_space<vmem>>, %arg3: memref<128x16xf32, #tpu.memory_space<vmem>>, %arg4: memref<256x32xf32, #tpu.memory_space<vmem>>, %arg5: memref<32x128xf32, #tpu.memory_space<vmem>>, %arg6: memref<1x128xf32, #tpu.memory_space<vmem>>, %arg7: memref<8x128xf32, #tpu.memory_space<vmem>>, %arg8: memref<56x16xf32, #tpu.memory_space<vmem>>, %arg9: memref<8x256xf32, #tpu.memory_space<vmem>>) attributes {dimension_semantics = [], scalar_prefetch = 0 : i64, scratch_operands = 2 : i64, tpu.core_type = #tpu.core_type<tc>} {
    %c0 = arith.constant 0 : index
    %c0_0 = arith.constant 0 : index
    %0 = vector.load %arg0[%c0, %c0_0] : memref<56x256xf32, #tpu.memory_space<vmem>>, vector<56x256xf32>
    %c0_1 = arith.constant 0 : index
    %c0_2 = arith.constant 0 : index
    %1 = vector.load %arg1[%c0_1, %c0_2] : memref<256x128xf32, #tpu.memory_space<vmem>>, vector<256x128xf32>
    %cst = arith.constant dense<0.000000e+00> : vector<56x128xf32>
    %2 = tpu.matmul %0, %1, %cst {dimension_numbers = #tpu.dot_dimension_numbers<[1], [0], [0], [1], [0, 0, 1, 1], [], []>} : vector<56x256xf32>, vector<256x128xf32>, vector<56x128xf32> -> vector<56x128xf32>
    %c0_3 = arith.constant 0 : index
    %c0_4 = arith.constant 0 : index
    %3 = vector.load %arg2[%c0_3, %c0_4] : memref<1x128xf32, #tpu.memory_space<vmem>>, vector<1x128xf32>
    %4 = vector.broadcast %3 : vector<1x128xf32> to vector<56x128xf32>
    %5 = arith.addf %2, %4 : vector<56x128xf32>
    %cst_5 = arith.constant 0.000000e+00 : f32
    %6 = vector.broadcast %cst_5 : f32 to vector<56x128xf32>
    %7 = arith.cmpf oge, %5, %6 : vector<56x128xf32>
    %cst_6 = arith.constant 2.000000e-01 : f32
    %8 = vector.broadcast %cst_6 : f32 to vector<56x128xf32>
    %9 = arith.mulf %8, %5 : vector<56x128xf32>
    %10 = arith.select %7, %5, %9 : vector<56x128xi1>, vector<56x128xf32>
    %c0_7 = arith.constant 0 : index
    %c0_8 = arith.constant 0 : index
    %11 = vector.load %arg3[%c0_7, %c0_8] : memref<128x16xf32, #tpu.memory_space<vmem>>, vector<128x16xf32>
    %cst_9 = arith.constant dense<0.000000e+00> : vector<56x16xf32>
    %12 = tpu.matmul %10, %11, %cst_9 {dimension_numbers = #tpu.dot_dimension_numbers<[1], [0], [0], [1], [0, 0, 1, 1], [], []>} : vector<56x128xf32>, vector<128x16xf32>, vector<56x16xf32> -> vector<56x16xf32>
    %13 = vector.extract_strided_slice %12 {offsets = [0, 0], sizes = [50, 16], strides = [1, 1]} : vector<56x16xf32> to vector<50x16xf32>
    %cst_10 = arith.constant dense<0.000000e+00> : vector<16xf32>
    %14 = vector.multi_reduction <add>, %13, %cst_10 [0] : vector<50x16xf32> to vector<16xf32>
    %15 = vector.shape_cast %14 : vector<16xf32> to vector<1x16xf32>
    %cst_11 = arith.constant 5.000000e+01 : f32
    %16 = vector.broadcast %cst_11 : f32 to vector<1x16xf32>
    %17 = arith.divf %15, %16 : vector<1x16xf32>
    %18 = vector.broadcast %17 : vector<1x16xf32> to vector<50x16xf32>
    %19 = arith.subf %13, %18 : vector<50x16xf32>
    %20 = arith.mulf %19, %19 : vector<50x16xf32>
    %cst_12 = arith.constant dense<0.000000e+00> : vector<16xf32>
    %21 = vector.multi_reduction <add>, %20, %cst_12 [0] : vector<50x16xf32> to vector<16xf32>
    %22 = vector.shape_cast %21 : vector<16xf32> to vector<1x16xf32>
    %cst_13 = arith.constant 5.000000e+01 : f32
    %23 = vector.broadcast %cst_13 : f32 to vector<1x16xf32>
    %24 = arith.divf %22, %23 : vector<1x16xf32>
    %25 = vector.broadcast %17 : vector<1x16xf32> to vector<56x16xf32>
    %26 = arith.subf %12, %25 : vector<56x16xf32>
    %cst_14 = arith.constant 9.99999974E-6 : f32
    %27 = vector.broadcast %cst_14 : f32 to vector<1x16xf32>
    %28 = arith.addf %24, %27 : vector<1x16xf32>
    %29 = math.rsqrt %28 : vector<1x16xf32>
    %30 = vector.broadcast %29 : vector<1x16xf32> to vector<56x16xf32>
    %31 = arith.mulf %26, %30 : vector<56x16xf32>
    %cst_15 = arith.constant 0.000000e+00 : f32
    %32 = vector.broadcast %cst_15 : f32 to vector<56x16xf32>
    %33 = arith.cmpf oge, %31, %32 : vector<56x16xf32>
    %cst_16 = arith.constant 2.000000e-01 : f32
    %34 = vector.broadcast %cst_16 : f32 to vector<56x16xf32>
    %35 = arith.mulf %34, %31 : vector<56x16xf32>
    %36 = arith.select %33, %31, %35 : vector<56x16xi1>, vector<56x16xf32>
    %c0_17 = arith.constant 0 : index
    %c0_18 = arith.constant 0 : index
    %37 = vector.load %arg8[%c0_17, %c0_18] : memref<56x16xf32, #tpu.memory_space<vmem>>, vector<56x16xf32>
    tpu.vector_store %arg8[%c0_17, %c0_18], %36 {strides = array<i32>} : memref<56x16xf32, #tpu.memory_space<vmem>>, vector<56x16xf32>,
    %cst_19 = arith.constant 0.000000e+00 : f32
    %38 = vector.broadcast %cst_19 : f32 to vector<8x256xf32>
    %c0_20 = arith.constant 0 : index
    %c0_21 = arith.constant 0 : index
    %39 = vector.load %arg9[%c0_20, %c0_21] : memref<8x256xf32, #tpu.memory_space<vmem>>, vector<8x256xf32>
    tpu.vector_store %arg9[%c0_20, %c0_21], %38 {strides = array<i32>} : memref<8x256xf32, #tpu.memory_space<vmem>>, vector<8x256xf32>,
    %c0_22 = arith.constant 0 : index
    %c0_23 = arith.constant 0 : index
    %40 = vector.load %arg8[%c0_22, %c0_23] : memref<56x16xf32, #tpu.memory_space<vmem>>, vector<2x16xf32>
    %c0_24 = arith.constant 0 : index
    %c0_25 = arith.constant 0 : index
    %41 = vector.load %arg9[%c0_24, %c0_25] : memref<8x256xf32, #tpu.memory_space<vmem>>, vector<2x16xf32>
    tpu.vector_store %arg9[%c0_24, %c0_25], %40 {strides = array<i32>} : memref<8x256xf32, #tpu.memory_space<vmem>>, vector<2x16xf32>,
    %c2 = arith.constant 2 : index
    %c0_26 = arith.constant 0 : index
    %42 = vector.load %arg8[%c2, %c0_26] : memref<56x16xf32, #tpu.memory_space<vmem>>, vector<2x16xf32>
    %c0_27 = arith.constant 0 : index
    %c16 = arith.constant 16 : index
    %43 = vector.load %arg9[%c0_27, %c16] : memref<8x256xf32, #tpu.memory_space<vmem>>, vector<2x16xf32>
    tpu.vector_store %arg9[%c0_27, %c16], %42 {strides = array<i32>} : memref<8x256xf32, #tpu.memory_space<vmem>>, vector<2x16xf32>,
    %c4 = arith.constant 4 : index
    %c0_28 = arith.constant 0 : index
    %44 = vector.load %arg8[%c4, %c0_28] : memref<56x16xf32, #tpu.memory_space<vmem>>, vector<2x16xf32>
    %c0_29 = arith.constant 0 : index
    %c32 = arith.constant 32 : index
    %45 = vector.load %arg9[%c0_29, %c32] : memref<8x256xf32, #tpu.memory_space<vmem>>, vector<2x16xf32>
    tpu.vector_store %arg9[%c0_29, %c32], %44 {strides = array<i32>} : memref<8x256xf32, #tpu.memory_space<vmem>>, vector<2x16xf32>,
    %c6 = arith.constant 6 : index
    %c0_30 = arith.constant 0 : index
    %46 = vector.load %arg8[%c6, %c0_30] : memref<56x16xf32, #tpu.memory_space<vmem>>, vector<2x16xf32>
    %c0_31 = arith.constant 0 : index
    %c48 = arith.constant 48 : index
    %47 = vector.load %arg9[%c0_31, %c48] : memref<8x256xf32, #tpu.memory_space<vmem>>, vector<2x16xf32>
    tpu.vector_store %arg9[%c0_31, %c48], %46 {strides = array<i32>} : memref<8x256xf32, #tpu.memory_space<vmem>>, vector<2x16xf32>,
    %c8 = arith.constant 8 : index
    %c0_32 = arith.constant 0 : index
    %48 = vector.load %arg8[%c8, %c0_32] : memref<56x16xf32, #tpu.memory_space<vmem>>, vector<2x16xf32>
    %c0_33 = arith.constant 0 : index
    %c64 = arith.constant 64 : index
    %49 = vector.load %arg9[%c0_33, %c64] : memref<8x256xf32, #tpu.memory_space<vmem>>, vector<2x16xf32>
    tpu.vector_store %arg9[%c0_33, %c64], %48 {strides = array<i32>} : memref<8x256xf32, #tpu.memory_space<vmem>>, vector<2x16xf32>,
    %c10 = arith.constant 10 : index
    %c0_34 = arith.constant 0 : index
    %50 = vector.load %arg8[%c10, %c0_34] : memref<56x16xf32, #tpu.memory_space<vmem>>, vector<2x16xf32>
    %c0_35 = arith.constant 0 : index
    %c80 = arith.constant 80 : index
    %51 = vector.load %arg9[%c0_35, %c80] : memref<8x256xf32, #tpu.memory_space<vmem>>, vector<2x16xf32>
    tpu.vector_store %arg9[%c0_35, %c80], %50 {strides = array<i32>} : memref<8x256xf32, #tpu.memory_space<vmem>>, vector<2x16xf32>,
    %c12 = arith.constant 12 : index
    %c0_36 = arith.constant 0 : index
    %52 = vector.load %arg8[%c12, %c0_36] : memref<56x16xf32, #tpu.memory_space<vmem>>, vector<2x16xf32>
    %c0_37 = arith.constant 0 : index
    %c96 = arith.constant 96 : index
    %53 = vector.load %arg9[%c0_37, %c96] : memref<8x256xf32, #tpu.memory_space<vmem>>, vector<2x16xf32>
    tpu.vector_store %arg9[%c0_37, %c96], %52 {strides = array<i32>} : memref<8x256xf32, #tpu.memory_space<vmem>>, vector<2x16xf32>,
    %c14 = arith.constant 14 : index
    %c0_38 = arith.constant 0 : index
    %54 = vector.load %arg8[%c14, %c0_38] : memref<56x16xf32, #tpu.memory_space<vmem>>, vector<2x16xf32>
    %c0_39 = arith.constant 0 : index
    %c112 = arith.constant 112 : index
    %55 = vector.load %arg9[%c0_39, %c112] : memref<8x256xf32, #tpu.memory_space<vmem>>, vector<2x16xf32>
    tpu.vector_store %arg9[%c0_39, %c112], %54 {strides = array<i32>} : memref<8x256xf32, #tpu.memory_space<vmem>>, vector<2x16xf32>,
    %c16_40 = arith.constant 16 : index
    %c0_41 = arith.constant 0 : index
    %56 = vector.load %arg8[%c16_40, %c0_41] : memref<56x16xf32, #tpu.memory_space<vmem>>, vector<2x16xf32>
    %c0_42 = arith.constant 0 : index
    %c128 = arith.constant 128 : index
    %57 = vector.load %arg9[%c0_42, %c128] : memref<8x256xf32, #tpu.memory_space<vmem>>, vector<2x16xf32>
    tpu.vector_store %arg9[%c0_42, %c128], %56 {strides = array<i32>} : memref<8x256xf32, #tpu.memory_space<vmem>>, vector<2x16xf32>,
    %c18 = arith.constant 18 : index
    %c0_43 = arith.constant 0 : index
    %58 = vector.load %arg8[%c18, %c0_43] : memref<56x16xf32, #tpu.memory_space<vmem>>, vector<2x16xf32>
    %c0_44 = arith.constant 0 : index
    %c144 = arith.constant 144 : index
    %59 = vector.load %arg9[%c0_44, %c144] : memref<8x256xf32, #tpu.memory_space<vmem>>, vector<2x16xf32>
    tpu.vector_store %arg9[%c0_44, %c144], %58 {strides = array<i32>} : memref<8x256xf32, #tpu.memory_space<vmem>>, vector<2x16xf32>,
    %c20 = arith.constant 20 : index
    %c0_45 = arith.constant 0 : index
    %60 = vector.load %arg8[%c20, %c0_45] : memref<56x16xf32, #tpu.memory_space<vmem>>, vector<2x16xf32>
    %c0_46 = arith.constant 0 : index
    %c160 = arith.constant 160 : index
    %61 = vector.load %arg9[%c0_46, %c160] : memref<8x256xf32, #tpu.memory_space<vmem>>, vector<2x16xf32>
    tpu.vector_store %arg9[%c0_46, %c160], %60 {strides = array<i32>} : memref<8x256xf32, #tpu.memory_space<vmem>>, vector<2x16xf32>,
    %c22 = arith.constant 22 : index
    %c0_47 = arith.constant 0 : index
    %62 = vector.load %arg8[%c22, %c0_47] : memref<56x16xf32, #tpu.memory_space<vmem>>, vector<2x16xf32>
    %c0_48 = arith.constant 0 : index
    %c176 = arith.constant 176 : index
    %63 = vector.load %arg9[%c0_48, %c176] : memref<8x256xf32, #tpu.memory_space<vmem>>, vector<2x16xf32>
    tpu.vector_store %arg9[%c0_48, %c176], %62 {strides = array<i32>} : memref<8x256xf32, #tpu.memory_space<vmem>>, vector<2x16xf32>,
    %c24 = arith.constant 24 : index
    %c0_49 = arith.constant 0 : index
    %64 = vector.load %arg8[%c24, %c0_49] : memref<56x16xf32, #tpu.memory_space<vmem>>, vector<2x16xf32>
    %c0_50 = arith.constant 0 : index
    %c192 = arith.constant 192 : index
    %65 = vector.load %arg9[%c0_50, %c192] : memref<8x256xf32, #tpu.memory_space<vmem>>, vector<2x16xf32>
    tpu.vector_store %arg9[%c0_50, %c192], %64 {strides = array<i32>} : memref<8x256xf32, #tpu.memory_space<vmem>>, vector<2x16xf32>,
    %c26 = arith.constant 26 : index
    %c0_51 = arith.constant 0 : index
    %66 = vector.load %arg8[%c26, %c0_51] : memref<56x16xf32, #tpu.memory_space<vmem>>, vector<2x16xf32>
    %c0_52 = arith.constant 0 : index
    %c208 = arith.constant 208 : index
    %67 = vector.load %arg9[%c0_52, %c208] : memref<8x256xf32, #tpu.memory_space<vmem>>, vector<2x16xf32>
    tpu.vector_store %arg9[%c0_52, %c208], %66 {strides = array<i32>} : memref<8x256xf32, #tpu.memory_space<vmem>>, vector<2x16xf32>,
    %c28 = arith.constant 28 : index
    %c0_53 = arith.constant 0 : index
    %68 = vector.load %arg8[%c28, %c0_53] : memref<56x16xf32, #tpu.memory_space<vmem>>, vector<2x16xf32>
    %c0_54 = arith.constant 0 : index
    %c224 = arith.constant 224 : index
    %69 = vector.load %arg9[%c0_54, %c224] : memref<8x256xf32, #tpu.memory_space<vmem>>, vector<2x16xf32>
    tpu.vector_store %arg9[%c0_54, %c224], %68 {strides = array<i32>} : memref<8x256xf32, #tpu.memory_space<vmem>>, vector<2x16xf32>,
    %c30 = arith.constant 30 : index
    %c0_55 = arith.constant 0 : index
    %70 = vector.load %arg8[%c30, %c0_55] : memref<56x16xf32, #tpu.memory_space<vmem>>, vector<2x16xf32>
    %c0_56 = arith.constant 0 : index
    %c240 = arith.constant 240 : index
    %71 = vector.load %arg9[%c0_56, %c240] : memref<8x256xf32, #tpu.memory_space<vmem>>, vector<2x16xf32>
    tpu.vector_store %arg9[%c0_56, %c240], %70 {strides = array<i32>} : memref<8x256xf32, #tpu.memory_space<vmem>>, vector<2x16xf32>,
    %c0_57 = arith.constant 0 : index
    %c0_58 = arith.constant 0 : index
    %72 = vector.load %arg9[%c0_57, %c0_58] : memref<8x256xf32, #tpu.memory_space<vmem>>, vector<8x256xf32>
    %c0_59 = arith.constant 0 : index
    %c0_60 = arith.constant 0 : index
    %73 = vector.load %arg4[%c0_59, %c0_60] : memref<256x32xf32, #tpu.memory_space<vmem>>, vector<256x32xf32>
    %cst_61 = arith.constant dense<0.000000e+00> : vector<8x32xf32>
    %74 = tpu.matmul %72, %73, %cst_61 {dimension_numbers = #tpu.dot_dimension_numbers<[1], [0], [0], [1], [0, 0, 1, 1], [], []>} : vector<8x256xf32>, vector<256x32xf32>, vector<8x32xf32> -> vector<8x32xf32>
    %75 = vector.extract_strided_slice %74 {offsets = [0, 0], sizes = [2, 32], strides = [1, 1]} : vector<8x32xf32> to vector<2x32xf32>
    %cst_62 = arith.constant dense<0.000000e+00> : vector<32xf32>
    %76 = vector.multi_reduction <add>, %75, %cst_62 [0] : vector<2x32xf32> to vector<32xf32>
    %77 = vector.shape_cast %76 : vector<32xf32> to vector<1x32xf32>
    %cst_63 = arith.constant 2.000000e+00 : f32
    %78 = vector.broadcast %cst_63 : f32 to vector<1x32xf32>
    %79 = arith.divf %77, %78 : vector<1x32xf32>
    %80 = vector.broadcast %79 : vector<1x32xf32> to vector<2x32xf32>
    %81 = arith.subf %75, %80 : vector<2x32xf32>
    %82 = arith.mulf %81, %81 : vector<2x32xf32>
    %cst_64 = arith.constant dense<0.000000e+00> : vector<32xf32>
    %83 = vector.multi_reduction <add>, %82, %cst_64 [0] : vector<2x32xf32> to vector<32xf32>
    %84 = vector.shape_cast %83 : vector<32xf32> to vector<1x32xf32>
    %cst_65 = arith.constant 2.000000e+00 : f32
    %85 = vector.broadcast %cst_65 : f32 to vector<1x32xf32>
    %86 = arith.divf %84, %85 : vector<1x32xf32>
    %87 = vector.broadcast %79 : vector<1x32xf32> to vector<8x32xf32>
    %88 = arith.subf %74, %87 : vector<8x32xf32>
    %cst_66 = arith.constant 9.99999974E-6 : f32
    %89 = vector.broadcast %cst_66 : f32 to vector<1x32xf32>
    %90 = arith.addf %86, %89 : vector<1x32xf32>
    %91 = math.rsqrt %90 : vector<1x32xf32>
    %92 = vector.broadcast %91 : vector<1x32xf32> to vector<8x32xf32>
    %93 = arith.mulf %88, %92 : vector<8x32xf32>
    %cst_67 = arith.constant 0.000000e+00 : f32
    %94 = vector.broadcast %cst_67 : f32 to vector<8x32xf32>
    %95 = arith.cmpf oge, %93, %94 : vector<8x32xf32>
    %cst_68 = arith.constant 2.000000e-01 : f32
    %96 = vector.broadcast %cst_68 : f32 to vector<8x32xf32>
    %97 = arith.mulf %96, %93 : vector<8x32xf32>
    %98 = arith.select %95, %93, %97 : vector<8x32xi1>, vector<8x32xf32>
    %c0_69 = arith.constant 0 : index
    %c0_70 = arith.constant 0 : index
    %99 = vector.load %arg5[%c0_69, %c0_70] : memref<32x128xf32, #tpu.memory_space<vmem>>, vector<32x128xf32>
    %cst_71 = arith.constant dense<0.000000e+00> : vector<8x128xf32>
    %100 = tpu.matmul %98, %99, %cst_71 {dimension_numbers = #tpu.dot_dimension_numbers<[1], [0], [0], [1], [0, 0, 1, 1], [], []>} : vector<8x32xf32>, vector<32x128xf32>, vector<8x128xf32> -> vector<8x128xf32>
    %c0_72 = arith.constant 0 : index
    %c0_73 = arith.constant 0 : index
    %101 = vector.load %arg6[%c0_72, %c0_73] : memref<1x128xf32, #tpu.memory_space<vmem>>, vector<1x128xf32>
    %102 = vector.broadcast %101 : vector<1x128xf32> to vector<8x128xf32>
    %103 = arith.addf %100, %102 : vector<8x128xf32>
    %cst_74 = arith.constant 0.000000e+00 : f32
    %104 = vector.broadcast %cst_74 : f32 to vector<8x128xf32>
    %105 = arith.cmpf oge, %103, %104 : vector<8x128xf32>
    %cst_75 = arith.constant 2.000000e-01 : f32
    %106 = vector.broadcast %cst_75 : f32 to vector<8x128xf32>
    %107 = arith.mulf %106, %103 : vector<8x128xf32>
    %108 = arith.select %105, %103, %107 : vector<8x128xi1>, vector<8x128xf32>
    %c0_76 = arith.constant 0 : index
    %c0_77 = arith.constant 0 : index
    %109 = vector.load %arg7[%c0_76, %c0_77] : memref<8x128xf32, #tpu.memory_space<vmem>>, vector<8x128xf32>
    tpu.vector_store %arg7[%c0_76, %c0_77], %108 {strides = array<i32>} : memref<8x128xf32, #tpu.memory_space<vmem>>, vector<8x128xf32>,
    return
  }
}

</mosaic_0001>

<bundles_post_ra>
// kernel: dmn_forward.1
= control target key start
LH: loop header
LB: loop body
LE: loop exit
PB: predicated region body
PF: predicated region fallthrough
CT: control target
= control target key end

     0   :  { %v1021_v3 = vmov 0.0|0.0   ;;  %vm1022_vm0 = vmmov 0   ;;  %vm316_vm8 = vcmask 130048   ;;  %vm328_vm9 = vcmask 123904   ;;  %s1024_s30 = smov 32   ;;  %s1026_s25 = smov 48   ;;  %s1422_s1 = inlined_call_operand.vmem [shape: f32[256,128], index: 1, kind: input, shape index: {}]   ;;  %s1423_s0 = inlined_call_operand.vmem [shape: f32[56,256], index: 0, kind: input, shape index: {}]   ;;  %s1424_s3 = inlined_call_operand.vmem [shape: f32[128,16], index: 3, kind: input, shape index: {}]   ;;  %s1425_s2 = inlined_call_operand.vmem [shape: f32[1,128], index: 2, kind: input, shape index: {}, may-alias: {2,6}]   ;;  %s1426_s4 = inlined_call_operand.vmem [shape: f32[256,32], index: 4, kind: input, shape index: {}]   ;;  %s1427_s5 = inlined_call_operand.vmem [shape: f32[32,128], index: 5, kind: input, shape index: {}]   ;;  %s1428_s6 = inlined_call_operand.vmem [shape: f32[1,128], index: 6, kind: input, shape index: {}, may-alias: {2,6}]   ;;  %s1429_s7 = inlined_call_operand.vmem [shape: f32[8,128], index: 7, kind: output, shape index: {}]  }
   0x1   :  { %v56_v0 = vld [vmem:[%s1422_s1 + $0x80] sm:$0xff]  ;;  %v57_v1 = vld [vmem:[%s1422_s1 + $0x88] sm:$0xff]  ;;  %945 = vmatprep.subr.bf16.mxu1 %v1021_v3  ;;  %v58_v6 = vld [vmem:[%s1422_s1 + $0x90] sm:$0xff]  ;;  %s1028_s17 = smov 80   ;;  %s1029_s21 = smov 96   ;;  %vm419_vm14 = vcmask 255104  }
   0x2   :  { %v40_v2 = vld [vmem:[%s1422_s1] sm:$0xff]  ;;  %v913_v4 = vpack.c.bf16 %v57_v1, %v56_v0  ;;  %v41_v5 = vld [vmem:[%s1422_s1 + $0x8] sm:$0xff]  ;;  %v59_v7 = vld [vmem:[%s1422_s1 + $0x98] sm:$0xff]  ;;  %s1030_s22 = smov 112   ;;  %vm426_vm15 = vcmask 386304  }
   0x3   :  { %v915_v8 = vpack.c.bf16 %v41_v5, %v40_v2  ;;  %v917_v9 = vpack.c.bf16 %v59_v7, %v58_v6  ;;  %v42_v10 = vld [vmem:[%s1422_s1 + $0x10] sm:$0xff]  ;;  %v43_v11 = vld [vmem:[%s1422_s1 + $0x18] sm:$0xff]  ;;  %v60_v12 = vld [vmem:[%s1422_s1 + $0xa0] sm:$0xff] }
   0x4   :  { %914 = vmatprep.subr.bf16.mxu0 %v913_v4  ;;  %v61_v13 = vld [vmem:[%s1422_s1 + $0xa8] sm:$0xff]  ;;  %v919_v14 = vpack.c.bf16 %v43_v11, %v42_v10  ;;  %v44_v16 = vld [vmem:[%s1422_s1 + $0x20] sm:$0xff]  ;;  %v62_v18 = vld [vmem:[%s1422_s1 + $0xb0] sm:$0xff] }
   0x5   :  { %916 = vmatpush3.bf16.msra.mxu0 %v915_v8  ;;  %v921_v15 = vpack.c.bf16 %v61_v13, %v60_v12  ;;  %v45_v17 = vld [vmem:[%s1422_s1 + $0x28] sm:$0xff]  ;;  %v63_v19 = vld [vmem:[%s1422_s1 + $0xb8] sm:$0xff]  ;;  %v46_v22 = vld [vmem:[%s1422_s1 + $0x30] sm:$0xff] }
   0x6   :  { %918 = vmatprep.subr.bf16.mxu0 %v917_v9  ;;  %v923_v20 = vpack.c.bf16 %v45_v17, %v44_v16  ;;  %v925_v21 = vpack.c.bf16 %v63_v19, %v62_v18  ;;  %v47_v23 = vld [vmem:[%s1422_s1 + $0x38] sm:$0xff]  ;;  %v64_v24 = vld [vmem:[%s1422_s1 + $0xc0] sm:$0xff]  ;;  %v65_v25 = vld [vmem:[%s1422_s1 + $0xc8] sm:$0xff] }
   0x7   :  { %v27_v26 = vld [vmem:[%s1423_s0 + $0x8] sm:$0xff]  ;;  %v927_v27 = vpack.c.bf16 %v47_v23, %v46_v22  ;;  %v929_v28 = vpack.c.bf16 %v65_v25, %v64_v24  ;;  %v48_v29 = vld [vmem:[%s1422_s1 + $0x40] sm:$0xff]  ;;  %v66_v31 = vld [vmem:[%s1422_s1 + $0xd0] sm:$0xff]  ;;  %v1023_v24 = vmov 0.0  }
   0x8   :  { %143 = vmatprep.mubr.f32.mxu0 %v27_v26  ;;  %v49_v30 = vld [vmem:[%s1422_s1 + $0x48] sm:$0xff]  ;;  %v67_v32 = vld [vmem:[%s1422_s1 + $0xd8] sm:$0xff]  ;;  %v200_v33 = vld [vmem:[%s1424_s3] sm:$0xff]  ;;  %881 = vmatprep.mubr.msk.f32.mxu1 %vm1022_vm0, %v1023_v24  ;;  %410 = vst [vmem:[#allocation3] sm:$0xff] %v1023_v24 }
   0x9   :  { %920 = vmatpush3.bf16.msra.mxu0 %v919_v14  ;;  %v201_v34 = vld [vmem:[%s1424_s3 + $0x8] sm:$0xff]  ;;  %v931_v35 = vpack.c.bf16 %v49_v30, %v48_v29  ;;  %v202_v37 = vld [vmem:[%s1424_s3 + $0x10] sm:$0xff]  ;;  %v203_v38 = vld [vmem:[%s1424_s3 + $0x18] sm:$0xff]  ;;  %v933_v39 = vpack.c.bf16 %v67_v32, %v66_v31  ;;  %411 = vst [vmem:[#allocation3 + $0x8] sm:$0xff] %v1023_v24 }
   0xa   :  { %922 = vmatprep.subr.bf16.mxu0 %v921_v15  ;;  %v946_v36 = vpack.c.bf16 %v201_v34, %v200_v33  ;;  %v50_v40 = vld [vmem:[%s1422_s1 + $0x50] sm:$0xff]  ;;  %v51_v41 = vld [vmem:[%s1422_s1 + $0x58] sm:$0xff]  ;;  %v68_v42 = vld [vmem:[%s1422_s1 + $0xe0] sm:$0xff]  ;;  %v949_v44 = vpack.c.bf16 %v203_v38, %v202_v37 }
   0xb   :  { %v69_v43 = vld [vmem:[%s1422_s1 + $0xe8] sm:$0xff]  ;;  %v204_v45 = vld [vmem:[%s1424_s3 + $0x20] sm:$0xff]  ;;  %v935_v47 = vpack.c.bf16 %v51_v41, %v50_v40  ;;  %v70_v51 = vld [vmem:[%s1422_s1 + $0xf0] sm:$0xff] }
   0xc   :  { %947 = vmatpush3.bf16.msra.mxu1 %v946_v36  ;;  %v205_v46 = vld [vmem:[%s1424_s3 + $0x28] sm:$0xff]  ;;  %v937_v48 = vpack.c.bf16 %v69_v43, %v68_v42  ;;  %v52_v49 = vld [vmem:[%s1422_s1 + $0x60] sm:$0xff]  ;;  %v71_v52 = vld [vmem:[%s1422_s1 + $0xf8] sm:$0xff] }
   0xd   :  { %924 = vmatpush3.bf16.msra.mxu0 %v923_v20  ;;  %948 = vmatprep.subr.bf16.mxu1 %v1021_v3  ;;  %v53_v50 = vld [vmem:[%s1422_s1 + $0x68] sm:$0xff]  ;;  %v952_v53 = vpack.c.bf16 %v205_v46, %v204_v45  ;;  %v206_v54 = vld [vmem:[%s1424_s3 + $0x30] sm:$0xff]  ;;  %v207_v55 = vld [vmem:[%s1424_s3 + $0x38] sm:$0xff]  ;;  %v941_v57 = vpack.c.bf16 %v71_v52, %v70_v51 }
   0xe   :  { %926 = vmatprep.subr.bf16.mxu0 %v925_v21  ;;  %v939_v56 = vpack.c.bf16 %v53_v50, %v52_v49  ;;  %v54_v58 = vld [vmem:[%s1422_s1 + $0x70] sm:$0xff]  ;;  %v55_v59 = vld [vmem:[%s1422_s1 + $0x78] sm:$0xff]  ;;  %v955_v60 = vpack.c.bf16 %v207_v55, %v206_v54  ;;  %v208_v61 = vld [vmem:[%s1424_s3 + $0x40] sm:$0xff] }
   0xf   :  { %v209_v62 = vld [vmem:[%s1424_s3 + $0x48] sm:$0xff]  ;;  %v943_v63 = vpack.c.bf16 %v55_v59, %v54_v58  ;;  %v210_v1 = vld [vmem:[%s1424_s3 + $0x50] sm:$0xff]  ;;  %v211_v2 = vld [vmem:[%s1424_s3 + $0x58] sm:$0xff] }
  0x10   :  { %950 = vmatpush3.bf16.msra.mxu1 %v949_v44  ;;  %v958_v0 = vpack.c.bf16 %v209_v62, %v208_v61  ;;  %v26_v4 = vld [vmem:[%s1423_s0] sm:$0xff]  ;;  %v29_v5 = vld [vmem:[%s1423_s0 + $0x18] sm:$0xff]  ;;  %v961_v6 = vpack.c.bf16 %v211_v2, %v210_v1  ;;  %v28_v7 = vld [vmem:[%s1423_s0 + $0x10] sm:$0xff] }
  0x11   :  { %928 = vmatpush3.bf16.msra.mxu0 %v927_v27  ;;  %951 = vmatprep.subr.bf16.mxu1 %v1021_v3  ;;  %v31_v8 = vld [vmem:[%s1423_s0 + $0x28] sm:$0xff]  ;;  %v30_v9 = vld [vmem:[%s1423_s0 + $0x20] sm:$0xff]  ;;  %v33_v10 = vld [vmem:[%s1423_s0 + $0x38] sm:$0xff] }
  0x12   :  { %930 = vmatprep.subr.bf16.mxu0 %v929_v28  ;;  %v32_v11 = vld [vmem:[%s1423_s0 + $0x30] sm:$0xff]  ;;  %v35_v12 = vld [vmem:[%s1423_s0 + $0x48] sm:$0xff]  ;;  %v34_v13 = vld [vmem:[%s1423_s0 + $0x40] sm:$0xff] }
  0x13   :  { %v37_v14 = vld [vmem:[%s1423_s0 + $0x58] sm:$0xff]  ;;  %v36_v15 = vld [vmem:[%s1423_s0 + $0x50] sm:$0xff]  ;;  %v39_v16 = vld [vmem:[%s1423_s0 + $0x68] sm:$0xff] }
  0x14   :  { %953 = vmatpush3.bf16.msra.mxu1 %v952_v53  ;;  %v38_v17 = vld [vmem:[%s1423_s0 + $0x60] sm:$0xff]  ;;  %v213_v19 = vld [vmem:[%s1424_s3 + $0x68] sm:$0xff]  ;;  %v214_v21 = vld [vmem:[%s1424_s3 + $0x70] sm:$0xff]  ;;  %s1025_s0 = smov 16  }
  0x15   :  { %932 = vmatpush3.bf16.msra.mxu0 %v931_v35  ;;  %954 = vmatprep.subr.bf16.mxu1 %v1021_v3  ;;  %v212_v18 = vld [vmem:[%s1424_s3 + $0x60] sm:$0xff]  ;;  %v215_v22 = vld [vmem:[%s1424_s3 + $0x78] sm:$0xff]  ;;  %s1027_s3 = smov 64  }
  0x16   :  { %934 = vmatprep.subr.bf16.mxu0 %v933_v39  ;;  %v964_v20 = vpack.c.bf16 %v213_v19, %v212_v18  ;;  %v967_v23 = vpack.c.bf16 %v215_v22, %v214_v21  ;;  %v730_v26 = vld [vmem:[%s1425_s2] ss:$0 sm:$0xff] }
  0x18   :  { %956 = vmatpush3.bf16.msra.mxu1 %v955_v60 }
  0x19   :  { %936 = vmatpush3.bf16.msra.mxu0 %v935_v47  ;;  %957 = vmatprep.subr.bf16.mxu1 %v1021_v3 }
  0x1a   :  { %938 = vmatprep.subr.bf16.mxu0 %v937_v48 }
  0x1c   :  { %959 = vmatpush3.bf16.msra.mxu1 %v958_v0 }
  0x1d   :  { %940 = vmatpush3.bf16.msra.mxu0 %v939_v56  ;;  %960 = vmatprep.subr.bf16.mxu1 %v1021_v3 }
  0x1e   :  { %942 = vmatprep.subr.bf16.mxu0 %v941_v57 }
  0x20   :  { %962 = vmatpush3.bf16.msra.mxu1 %v961_v6 }
  0x21   :  { %944 = vmatpush3.bf16.msra.mxu0 %v943_v63  ;;  %963 = vmatprep.subr.bf16.mxu1 %v1021_v3 }
  0x24   :  { %144 = vmatmul.mubr.f32.vlgmr.msra.gmra.mrb[0].mxu0 %v26_v4  ;;  %965 = vmatpush3.bf16.msra.mxu1 %v964_v20 }
  0x25   :  { %148 = vmatprep.mubr.f32.mxu0 %v29_v5  ;;  %966 = vmatprep.subr.bf16.mxu1 %v1021_v3 }
  0x28   :  { %149 = vmatmul.mubr.f32.gmra.mrb[2].mxu0 %v28_v7  ;;  %968 = vmatpush3.bf16.msra.mxu1 %v967_v23 }
  0x29   :  { %153 = vmatprep.mubr.f32.mxu0 %v31_v8  ;;  %1001 = vmatprep.subr.bf16.mxu1 %v1021_v3 }
  0x2c   :  { %154 = vmatmul.mubr.f32.gmra.mrb[4].mxu0 %v30_v9 }
  0x2d   :  { %158 = vmatprep.mubr.f32.mxu0 %v33_v10 }
  0x30   :  { %159 = vmatmul.mubr.f32.gmra.mrb[6].mxu0 %v32_v11 }
  0x31   :  { %163 = vmatprep.mubr.f32.mxu0 %v35_v12 }
  0x34   :  { %164 = vmatmul.mubr.f32.gmra.mrb[8].mxu0 %v34_v13 }
  0x35   :  { %168 = vmatprep.mubr.f32.mxu0 %v37_v14 }
  0x38   :  { %169 = vmatmul.mubr.f32.gmra.mrb[10].mxu0 %v36_v15 }
  0x39   :  { %173 = vmatprep.mubr.f32.mxu0 %v39_v16 }
  0x3c   :  { %174 = vmatmul.mubr.f32.gmra.mrb[12].mxu0 %v38_v17 }
  0xf7   :  { %v765_v25 = vpop.f32.mrb[0].mxu0 }
  0xf8   :  { %v766_v27 = vpop.f32.mrb[1].mxu0 }
  0xf9   :  { %v767_v28 = vadd.f32 %v766_v27, %v765_v25 }
  0xfb   :  { %v146_v29 = vadd.f32 %v767_v28, %v730_v26  ;;  %v768_v30 = vpop.f32.mrb[2].mxu0 }
  0xfc   :  { %v769_v31 = vpop.f32.mrb[3].mxu0 }
  0xfd   :  { %v770_v32 = vadd.f32 %v769_v31, %v768_v30  ;;  %vm179_vm1 = vcmp.ge.f32.partialorder %v146_v29, 0.0  ;;  %v186_v33 = vmul.f32 0.2, %v146_v29 }
  0xff   :  { %v151_v34 = vadd.f32 %v770_v32, %v730_v26  ;;  %v771_v35 = vpop.f32.mrb[4].mxu0  ;;  %v193_v36 = vsel %vm179_vm1, %v146_v29, %v186_v33  ;;  %vm440_vm1 = vcmask 648704  }
 0x100   :  { %v772_v37 = vpop.f32.mrb[5].mxu0  ;;  %882 = vmatmul.mubr.f32.vlgmr.msra.gmra.mrb[0].mxu1 %v193_v36 }
 0x101   :  { %v773_v38 = vadd.f32 %v772_v37, %v771_v35  ;;  %884 = vmatprep.mubr.msk.f32.mxu1 %vm1022_vm0, %v1023_v24  ;;  %vm180_vm2 = vcmp.ge.f32.partialorder %v151_v34, 0.0  ;;  %v187_v39 = vmul.f32 0.2, %v151_v34 }
 0x103   :  { %v156_v40 = vadd.f32 %v773_v38, %v730_v26  ;;  %v774_v41 = vpop.f32.mrb[6].mxu0  ;;  %v194_v42 = vsel %vm180_vm2, %v151_v34, %v187_v39  ;;  %vm447_vm2 = vcmask 779904  }
 0x104   :  { %v775_v43 = vpop.f32.mrb[7].mxu0  ;;  %885 = vmatmul.mubr.f32.gmra.mrb[2].mxu1 %v194_v42 }
 0x105   :  { %v776_v44 = vadd.f32 %v775_v43, %v774_v41  ;;  %887 = vmatprep.mubr.msk.f32.mxu1 %vm1022_vm0, %v1023_v24  ;;  %vm181_vm3 = vcmp.ge.f32.partialorder %v156_v40, 0.0  ;;  %v188_v45 = vmul.f32 0.2, %v156_v40 }
 0x107   :  { %v161_v46 = vadd.f32 %v776_v44, %v730_v26  ;;  %v777_v47 = vpop.f32.mrb[8].mxu0  ;;  %v195_v48 = vsel %vm181_vm3, %v156_v40, %v188_v45  ;;  %vm454_vm3 = vcmask 911104  }
 0x108   :  { %v778_v49 = vpop.f32.mrb[9].mxu0  ;;  %888 = vmatmul.mubr.f32.gmra.mrb[4].mxu1 %v195_v48 }
 0x109   :  { %v779_v50 = vadd.f32 %v778_v49, %v777_v47  ;;  %890 = vmatprep.mubr.msk.f32.mxu1 %vm1022_vm0, %v1023_v24  ;;  %vm182_vm4 = vcmp.ge.f32.partialorder %v161_v46, 0.0  ;;  %v189_v51 = vmul.f32 0.2, %v161_v46 }
 0x10b   :  { %v166_v52 = vadd.f32 %v779_v50, %v730_v26  ;;  %v780_v53 = vpop.f32.mrb[10].mxu0  ;;  %v196_v54 = vsel %vm182_vm4, %v161_v46, %v189_v51  ;;  %vm461_vm4 = vcmask 1042304  }
 0x10c   :  { %v781_v55 = vpop.f32.mrb[11].mxu0  ;;  %891 = vmatmul.mubr.f32.gmra.mrb[6].mxu1 %v196_v54 }
 0x10d   :  { %v782_v56 = vadd.f32 %v781_v55, %v780_v53  ;;  %893 = vmatprep.mubr.msk.f32.mxu1 %vm1022_vm0, %v1023_v24  ;;  %vm183_vm5 = vcmp.ge.f32.partialorder %v166_v52, 0.0  ;;  %v190_v57 = vmul.f32 0.2, %v166_v52 }
 0x10f   :  { %v171_v58 = vadd.f32 %v782_v56, %v730_v26  ;;  %v783_v59 = vpop.f32.mrb[12].mxu0  ;;  %v197_v60 = vsel %vm183_vm5, %v166_v52, %v190_v57  ;;  %vm611_vm5 = vcmask 254976  }
 0x110   :  { %v784_v61 = vpop.f32.mrb[13].mxu0  ;;  %894 = vmatmul.mubr.f32.gmra.mrb[8].mxu1 %v197_v60 }
 0x111   :  { %v785_v62 = vadd.f32 %v784_v61, %v783_v59  ;;  %896 = vmatprep.mubr.msk.f32.mxu1 %vm1022_vm0, %v1023_v24  ;;  %vm184_vm6 = vcmp.ge.f32.partialorder %v171_v58, 0.0  ;;  %v191_v63 = vmul.f32 0.2, %v171_v58 }
 0x113   :  { %v176_v0 = vadd.f32 %v785_v62, %v730_v26  ;;  %v198_v1 = vsel %vm184_vm6, %v171_v58, %v191_v63 }
 0x114   :  { %897 = vmatmul.mubr.f32.gmra.mrb[10].mxu1 %v198_v1 }
 0x115   :  { %899 = vmatprep.mubr.msk.f32.mxu1 %vm1022_vm0, %v1023_v24  ;;  %vm185_vm7 = vcmp.ge.f32.partialorder %v176_v0, 0.0  ;;  %v192_v2 = vmul.f32 0.2, %v176_v0 }
 0x117   :  { %v199_v4 = vsel %vm185_vm7, %v176_v0, %v192_v2  ;;  %vm648_vm7 = vcmask 261120  }
 0x118   :  { %900 = vmatmul.mubr.f32.gmra.mrb[12].mxu1 %v199_v4 }
 0x119   :  { %910 = vmatprep.mubr.msk.f32.mxu1 %vm1022_vm0, %v1023_v24  ;;  %vm433_vm0 = vcmask 517504  }
 0x1d3   :  { %v282_v5 = vpop.f32.mrb[0].mxu1 }
 0x1d4   :  { %v883_v6 = vpop.f32.mrb[1].mxu1  ;;  %v317_v8 = vsel %vm316_vm8, %v282_v5, 0.0 }
 0x1d7   :  { %v287_v7 = vpop.f32.mrb[2].mxu1 }
 0x1d8   :  { %v318_v9 = vsel %vm316_vm8, %v287_v7, 0.0  ;;  %v886_v10 = vpop.f32.mrb[3].mxu1 }
 0x1d9   :  { %v319_v11 = vadd.f32 %v318_v9, %v317_v8 }
 0x1db   :  { %v292_v12 = vpop.f32.mrb[4].mxu1 }
 0x1dc   :  { %v320_v13 = vsel %vm316_vm8, %v292_v12, 0.0  ;;  %v889_v14 = vpop.f32.mrb[5].mxu1 }
 0x1dd   :  { %v321_v15 = vadd.f32 %v320_v13, %v319_v11 }
 0x1df   :  { %v297_v16 = vpop.f32.mrb[6].mxu1 }
 0x1e0   :  { %v322_v17 = vsel %vm316_vm8, %v297_v16, 0.0  ;;  %v892_v18 = vpop.f32.mrb[7].mxu1 }
 0x1e1   :  { %v323_v19 = vadd.f32 %v322_v17, %v321_v15  ;;  %v525_v17 = vld [vmem:[%s1426_s4 + $0x80] sm:$0xff] }
 0x1e3   :  { %v302_v20 = vpop.f32.mrb[8].mxu1 }
 0x1e4   :  { %v324_v21 = vsel %vm316_vm8, %v302_v20, 0.0  ;;  %v895_v22 = vpop.f32.mrb[9].mxu1 }
 0x1e5   :  { %v325_v23 = vadd.f32 %v324_v21, %v323_v19 }
 0x1e7   :  { %v307_v24 = vpop.f32.mrb[10].mxu1 }
 0x1e8   :  { %v326_v25 = vsel %vm316_vm8, %v307_v24, 0.0  ;;  %v898_v26 = vpop.f32.mrb[11].mxu1 }
 0x1e9   :  { %v327_v27 = vadd.f32 %v326_v25, %v325_v23  ;;  %v526_v25 = vld [vmem:[%s1426_s4 + $0x88] sm:$0xff]  ;;  %v509_v26 = vld [vmem:[%s1426_s4] sm:$0xff] }
 0x1eb   :  { %v312_v28 = vpop.f32.mrb[12].mxu1 }
 0x1ec   :  { %v329_v29 = vsel %vm328_vm9, %v312_v28, 0.0  ;;  %v901_v30 = vpop.f32.mrb[13].mxu1 }
 0x1ed   :  { %v330_v31 = vadd.f32 %v329_v29, %v327_v27  ;;  %v510_v27 = vld [vmem:[%s1426_s4 + $0x8] sm:$0xff]  ;;  %v527_v29 = vld [vmem:[%s1426_s4 + $0x90] sm:$0xff]  ;;  %v528_v30 = vld [vmem:[%s1426_s4 + $0x98] sm:$0xff] }
 0x1ef   :  { %v331_v32 = vrot.slane %v330_v31, 4 }
 0x1f1   :  { %v332_v33 = vadd.f32 %v331_v32, %v330_v31  ;;  %v511_v31 = vld [vmem:[%s1426_s4 + $0x10] sm:$0xff]  ;;  %v971_v32 = vpack.c.bf16 %v510_v27, %v509_v26 }
 0x1f3   :  { %v333_v34 = vrot.slane %v332_v33, 2 }
 0x1f5   :  { %v334_v35 = vadd.f32 %v333_v34, %v332_v33  ;;  %v973_v33 = vpack.c.bf16 %v528_v30, %v527_v29  ;;  %v512_v34 = vld [vmem:[%s1426_s4 + $0x18] sm:$0xff] }
 0x1f7   :  { %v335_v36 = vrot.slane %v334_v35, 1 }
 0x1f9   :  { %v336_v37 = vadd.f32 %v335_v36, %v334_v35  ;;  %v975_v35 = vpack.c.bf16 %v512_v34, %v511_v31  ;;  %v529_v36 = vld [vmem:[%s1426_s4 + $0xa0] sm:$0xff] }
 0x1fb   :  { %v338_v38 = vmul.f32 0.02, %v336_v37  ;;  %v530_v37 = vld [vmem:[%s1426_s4 + $0xa8] sm:$0xff] }
 0x1fd   :  { %v339_v39 = vsub.f32 %v282_v5, %v338_v38  ;;  %v340_v40 = vsub.f32 %v287_v7, %v338_v38  ;;  %v341_v41 = vsub.f32 %v292_v12, %v338_v38  ;;  %v342_v42 = vsub.f32 %v297_v16, %v338_v38 }
 0x1fe   :  { %v343_v43 = vsub.f32 %v302_v20, %v338_v38  ;;  %v344_v44 = vsub.f32 %v307_v24, %v338_v38  ;;  %v345_v45 = vsub.f32 %v312_v28, %v338_v38  ;;  %v969_v28 = vpack.c.bf16 %v526_v25, %v525_v17  ;;  %v513_v38 = vld [vmem:[%s1426_s4 + $0x20] sm:$0xff]  ;;  %v523_v17 = vld [vmem:[%s1426_s4 + $0x70] sm:$0xff] }
 0x1ff   :  { %v346_v46 = vmul.f32 %v339_v39, %v339_v39  ;;  %v347_v47 = vmul.f32 %v340_v40, %v340_v40  ;;  %v348_v48 = vmul.f32 %v341_v41, %v341_v41  ;;  %v349_v49 = vmul.f32 %v342_v42, %v342_v42 }
 0x200   :  { %v350_v53 = vmul.f32 %v343_v43, %v343_v43  ;;  %v351_v56 = vmul.f32 %v344_v44, %v344_v44  ;;  %v352_v59 = vmul.f32 %v345_v45, %v345_v45  ;;  %970 = vmatprep.subr.bf16.mxu0 %v969_v28 }
 0x201   :  { %v353_v50 = vsel %vm316_vm8, %v346_v46, 0.0  ;;  %v354_v51 = vsel %vm316_vm8, %v347_v47, 0.0  ;;  %v356_v54 = vsel %vm316_vm8, %v348_v48, 0.0  ;;  %v358_v57 = vsel %vm316_vm8, %v349_v49, 0.0  ;;  %972 = vmatpush3.bf16.msra.mxu0 %v971_v32  ;;  %v531_v48 = vld [vmem:[%s1426_s4 + $0xb0] sm:$0xff]  ;;  %v532_v49 = vld [vmem:[%s1426_s4 + $0xb8] sm:$0xff] }
 0x202   :  { %v355_v52 = vadd.f32 %v354_v51, %v353_v50  ;;  %v360_v60 = vsel %vm316_vm8, %v350_v53, 0.0  ;;  %v362_v62 = vsel %vm316_vm8, %v351_v56, 0.0  ;;  %v364_v0 = vsel %vm328_vm9, %v352_v59, 0.0  ;;  %974 = vmatprep.subr.bf16.mxu0 %v973_v33  ;;  %v515_v51 = vld [vmem:[%s1426_s4 + $0x30] sm:$0xff]  ;;  %v517_v56 = vld [vmem:[%s1426_s4 + $0x40] sm:$0xff]  ;;  %v518_v59 = vld [vmem:[%s1426_s4 + $0x48] sm:$0xff] }
 0x203   :  { %v981_v50 = vpack.c.bf16 %v532_v49, %v531_v48 }
 0x204   :  { %v357_v55 = vadd.f32 %v356_v54, %v355_v52  ;;  %v516_v52 = vld [vmem:[%s1426_s4 + $0x38] sm:$0xff]  ;;  %v533_v54 = vld [vmem:[%s1426_s4 + $0xc0] sm:$0xff] }
 0x205   :  { %976 = vmatpush3.bf16.msra.mxu0 %v975_v35  ;;  %v983_v53 = vpack.c.bf16 %v516_v52, %v515_v51 }
 0x206   :  { %v359_v58 = vadd.f32 %v358_v57, %v357_v55  ;;  %v534_v55 = vld [vmem:[%s1426_s4 + $0xc8] sm:$0xff] }
 0x208   :  { %v361_v61 = vadd.f32 %v360_v60, %v359_v58  ;;  %v985_v58 = vpack.c.bf16 %v534_v55, %v533_v54 }
 0x20a   :  { %v363_v63 = vadd.f32 %v362_v62, %v361_v61  ;;  %v987_v61 = vpack.c.bf16 %v518_v59, %v517_v56  ;;  %v535_v62 = vld [vmem:[%s1426_s4 + $0xd0] sm:$0xff] }
 0x20c   :  { %v365_v1 = vadd.f32 %v364_v0, %v363_v63  ;;  %v536_v63 = vld [vmem:[%s1426_s4 + $0xd8] sm:$0xff]  ;;  %v519_v0 = vld [vmem:[%s1426_s4 + $0x50] sm:$0xff] }
 0x20e   :  { %v366_v2 = vrot.slane %v365_v1, 4 }
 0x210   :  { %v367_v4 = vadd.f32 %v366_v2, %v365_v1  ;;  %v520_v1 = vld [vmem:[%s1426_s4 + $0x58] sm:$0xff]  ;;  %v989_v2 = vpack.c.bf16 %v536_v63, %v535_v62 }
 0x212   :  { %v368_v5 = vrot.slane %v367_v4, 2 }
 0x214   :  { %v369_v6 = vadd.f32 %v368_v5, %v367_v4 }
 0x216   :  { %v370_v7 = vrot.slane %v369_v6, 1 }
 0x218   :  { %v371_v8 = vadd.f32 %v370_v7, %v369_v6  ;;  %v991_v6 = vpack.c.bf16 %v520_v1, %v519_v0  ;;  %v537_v7 = vld [vmem:[%s1426_s4 + $0xe0] sm:$0xff] }
 0x21a   :  { %v372_v9 = vmul.f32 0.02, %v371_v8  ;;  %v538_v8 = vld [vmem:[%s1426_s4 + $0xe8] sm:$0xff] }
 0x21c   :  { %v373_v10 = vadd.f32 1e-05, %v372_v9  ;;  %v521_v9 = vld [vmem:[%s1426_s4 + $0x60] sm:$0xff] }
 0x21e   :  { %1017 = vrsqrt.f32 %v373_v10  ;;  %v522_v10 = vld [vmem:[%s1426_s4 + $0x68] sm:$0xff] }
 0x228   :  { %v1018_v11 = vpop.eup %1017 }
 0x229   :  { %v375_v12 = vmul.f32 %v1018_v11, %v339_v39  ;;  %v376_v13 = vmul.f32 %v1018_v11, %v340_v40  ;;  %v377_v14 = vmul.f32 %v1018_v11, %v341_v41  ;;  %v378_v15 = vmul.f32 %v1018_v11, %v342_v42  ;;  %v514_v39 = vld [vmem:[%s1426_s4 + $0x28] sm:$0xff] }
 0x22a   :  { %v977_v40 = vpack.c.bf16 %v530_v37, %v529_v36  ;;  %v979_v43 = vpack.c.bf16 %v514_v39, %v513_v38  ;;  %v993_v11 = vpack.c.bf16 %v538_v8, %v537_v7 }
 0x22b   :  { %vm382_vm10 = vcmp.ge.f32.partialorder %v375_v12, 0.0  ;;  %vm383_vm11 = vcmp.ge.f32.partialorder %v376_v13, 0.0  ;;  %vm384_vm12 = vcmp.ge.f32.partialorder %v377_v14, 0.0  ;;  %vm385_vm13 = vcmp.ge.f32.partialorder %v378_v15, 0.0 }
 0x22c   :  { %v389_v16 = vmul.f32 0.2, %v375_v12  ;;  %v390_v18 = vmul.f32 0.2, %v376_v13  ;;  %v391_v19 = vmul.f32 0.2, %v377_v14  ;;  %978 = vmatprep.subr.bf16.mxu0 %v977_v40 }
 0x22d   :  { %v392_v20 = vmul.f32 0.2, %v378_v15  ;;  %980 = vmatpush3.bf16.msra.mxu0 %v979_v43 }
 0x22e   :  { %v396_v21 = vsel %vm382_vm10, %v375_v12, %v389_v16  ;;  %v397_v22 = vsel %vm383_vm11, %v376_v13, %v390_v18  ;;  %v398_v23 = vsel %vm384_vm12, %v377_v14, %v391_v19  ;;  %982 = vmatprep.subr.bf16.mxu0 %v981_v50  ;;  %v539_v12 = vld [vmem:[%s1426_s4 + $0xf0] sm:$0xff]  ;;  %v540_v13 = vld [vmem:[%s1426_s4 + $0xf8] sm:$0xff]  ;;  %v995_v16 = vpack.c.bf16 %v522_v10, %v521_v9  ;;  %v731_v9 = vld [vmem:[%s1428_s6] ss:$0 sm:$0xff] }
 0x22f   :  { %v399_v24 = vsel %vm385_vm13, %v378_v15, %v392_v20  ;;  %403 = vst.msk [vmem:[#allocation2] sm:$0xff] %vm316_vm8, %v396_v21  ;;  %404 = vst.msk [vmem:[#allocation2 + $0x8] sm:$0xff] %vm316_vm8, %v397_v22  ;;  %v524_v18 = vld [vmem:[%s1426_s4 + $0x78] sm:$0xff]  ;;  %v997_v19 = vpack.c.bf16 %v540_v13, %v539_v12 }
 0x230   :  { %405 = vst.msk [vmem:[#allocation2 + $0x10] sm:$0xff] %vm316_vm8, %v398_v23  ;;  %406 = vst.msk [vmem:[#allocation2 + $0x18] sm:$0xff] %vm316_vm8, %v399_v24  ;;  %v999_v22 = vpack.c.bf16 %v524_v18, %v523_v17 }
 0x231   :  { %984 = vmatpush3.bf16.msra.mxu0 %v983_v53 }
 0x232   :  { %986 = vmatprep.subr.bf16.mxu0 %v985_v58 }
 0x235   :  { %988 = vmatpush3.bf16.msra.mxu0 %v987_v61 }
 0x236   :  { %v421_v44 = vld [vmem:[#allocation2 + $0x4] sm:$0x3]  ;;  %v414_v45 = vld [vmem:[#allocation2 + $0x2] sm:$0x3]  ;;  %v412_v47 = vld [vmem:[#allocation2] sm:$0x3]  ;;  %990 = vmatprep.subr.bf16.mxu0 %v989_v2 }
 0x237   :  { %v471_v41 = vld [vmem:[#allocation2 + $0x14] sm:$0x3]  ;;  %v465_v42 = vld [vmem:[#allocation2 + $0x12] sm:$0x3]  ;;  %v463_v46 = vld [vmem:[#allocation2 + $0x10] sm:$0x3] }
 0x238   :  { %473 = vrot.lane.b32.xlu1 %v471_v41, %s1024_s30  ;;  %467 = vrot.lane.b32.xlu0 %v465_v42, %s1025_s0  ;;  %464 = vst.msk [vmem:[#allocation3 + $0x8] sm:$0x3] %vm328_vm9, %v463_v46  ;;  %413 = vst.msk [vmem:[#allocation3] sm:$0x3] %vm328_vm9, %v412_v47  ;;  %v428_v57 = vld [vmem:[#allocation2 + $0x6] sm:$0x3] }
 0x239   :  { %v477_v60 = vld [vmem:[#allocation2 + $0x16] sm:$0x3]  ;;  %v435_v4 = vld [vmem:[#allocation2 + $0x8] sm:$0x3]  ;;  %v483_v5 = vld [vmem:[#allocation2 + $0x18] sm:$0x3]  ;;  %992 = vmatpush3.bf16.msra.mxu0 %v991_v6 }
 0x23a   :  { %v442_v14 = vld [vmem:[#allocation2 + $0xa] sm:$0x3]  ;;  %v489_v15 = vld [vmem:[#allocation2 + $0x1a] sm:$0x3]  ;;  %994 = vmatprep.subr.bf16.mxu0 %v993_v11  ;;  %v449_v20 = vld [vmem:[#allocation2 + $0xc] sm:$0x3] }
 0x23b   :  { %v495_v21 = vld [vmem:[#allocation2 + $0x1c] sm:$0x3]  ;;  %v456_v23 = vld [vmem:[#allocation2 + $0xe] sm:$0x3]  ;;  %v501_v24 = vld [vmem:[#allocation2 + $0x1e] sm:$0x3] }
 0x23c   :  { %423 = vrot.lane.b32.xlu1 %v421_v44, %s1024_s30  ;;  %416 = vrot.lane.b32.xlu0 %v414_v45, %s1025_s0  ;;  %v637_v41 = vld [vmem:[%s1427_s5] sm:$0xff]  ;;  %v638_v42 = vld [vmem:[%s1427_s5 + $0x8] sm:$0xff] }
 0x23d   :  { %996 = vmatpush3.bf16.msra.mxu0 %v995_v16  ;;  %v1002_v43 = vpack.c.bf16 %v638_v42, %v637_v41  ;;  %v639_v44 = vld [vmem:[%s1427_s5 + $0x10] sm:$0xff]  ;;  %v640_v45 = vld [vmem:[%s1427_s5 + $0x18] sm:$0xff] }
 0x23e   :  { %998 = vmatprep.subr.bf16.mxu0 %v997_v19  ;;  %v1005_v46 = vpack.c.bf16 %v640_v45, %v639_v44 }
 0x23f   :  { %1003 = vmatpush3.bf16.msra.mxu1 %v1002_v43 }
 0x240   :  { %430 = vrot.lane.b32.xlu1 %v428_v57, %s1026_s25  ;;  %479 = vrot.lane.b32.xlu0 %v477_v60, %s1026_s25 }
 0x241   :  { %1000 = vmatpush3.bf16.msra.mxu0 %v999_v22  ;;  %1004 = vmatprep.subr.bf16.mxu1 %v1021_v3 }
 0x243   :  { %1006 = vmatpush3.bf16.msra.mxu1 %v1005_v46 }
 0x244   :  { %437 = vrot.lane.b32.xlu1 %v435_v4, %s1027_s3  ;;  %485 = vrot.lane.b32.xlu0 %v483_v5, %s1027_s3 }
 0x248   :  { %444 = vrot.lane.b32.xlu1 %v442_v14, %s1028_s17  ;;  %491 = vrot.lane.b32.xlu0 %v489_v15, %s1028_s17 }
 0x24c   :  { %451 = vrot.lane.b32.xlu1 %v449_v20, %s1029_s21  ;;  %497 = vrot.lane.b32.xlu0 %v495_v21, %s1029_s21 }
 0x250   :  { %458 = vrot.lane.b32.xlu1 %v456_v23, %s1030_s22  ;;  %503 = vrot.lane.b32.xlu0 %v501_v24, %s1030_s22 }
 0x2aa   :  { %v474_v25 = vpop.permute.xlu1 %473  ;;  %v468_v26 = vpop.permute.xlu0 %467 }
 0x2ab   :  { %470 = vst.msk [vmem:[#allocation3 + $0x8] sm:$0x3] %vm419_vm14, %v468_v26 }
 0x2ac   :  { %476 = vst.msk [vmem:[#allocation3 + $0x8] sm:$0x3] %vm426_vm15, %v474_v25 }
 0x2ae   :  { %v424_v27 = vpop.permute.xlu1 %423  ;;  %v417_v28 = vpop.permute.xlu0 %416 }
 0x2af   :  { %420 = vst.msk [vmem:[#allocation3] sm:$0x3] %vm419_vm14, %v417_v28 }
 0x2b0   :  { %427 = vst.msk [vmem:[#allocation3] sm:$0x3] %vm426_vm15, %v424_v27 }
 0x2b2   :  { %v431_v29 = vpop.permute.xlu1 %430  ;;  %v480_v30 = vpop.permute.xlu0 %479 }
 0x2b3   :  { %434 = vst.msk [vmem:[#allocation3] sm:$0x3] %vm433_vm0, %v431_v29  ;;  %482 = vst.msk [vmem:[#allocation3 + $0x8] sm:$0x3] %vm433_vm0, %v480_v30 }
 0x2b6   :  { %v438_v31 = vpop.permute.xlu1 %437  ;;  %v486_v32 = vpop.permute.xlu0 %485 }
 0x2b7   :  { %441 = vst.msk [vmem:[#allocation3] sm:$0x3] %vm440_vm1, %v438_v31  ;;  %488 = vst.msk [vmem:[#allocation3 + $0x8] sm:$0x3] %vm440_vm1, %v486_v32 }
 0x2ba   :  { %v445_v33 = vpop.permute.xlu1 %444  ;;  %v492_v34 = vpop.permute.xlu0 %491 }
 0x2bb   :  { %448 = vst.msk [vmem:[#allocation3] sm:$0x3] %vm447_vm2, %v445_v33  ;;  %494 = vst.msk [vmem:[#allocation3 + $0x8] sm:$0x3] %vm447_vm2, %v492_v34 }
 0x2be   :  { %v452_v35 = vpop.permute.xlu1 %451  ;;  %v498_v36 = vpop.permute.xlu0 %497 }
 0x2bf   :  { %455 = vst.msk [vmem:[#allocation3] sm:$0x3] %vm454_vm3, %v452_v35  ;;  %500 = vst.msk [vmem:[#allocation3 + $0x8] sm:$0x3] %vm454_vm3, %v498_v36 }
 0x2c2   :  { %v459_v37 = vpop.permute.xlu1 %458  ;;  %v504_v38 = vpop.permute.xlu0 %503 }
 0x2c3   :  { %462 = vst.msk [vmem:[#allocation3] sm:$0x3] %vm461_vm4, %v459_v37  ;;  %506 = vst.msk [vmem:[#allocation3 + $0x8] sm:$0x3] %vm461_vm4, %v504_v38 }
 0x2ca   :  { %v508_v39 = vld [vmem:[#allocation3 + $0x8] sm:$0xff]  ;;  %v507_v40 = vld [vmem:[#allocation3] sm:$0xff] }
 0x2cb   :  { %605 = vmatprep.mubr.f32.mxu0 %v508_v39 }
 0x2cc   :  { %606 = vmatmul.mubr.f32.vlgmr.msra.gmra.mrb[14].mxu0 %v507_v40 }
 0x39f   :  { %v841_v47 = vpop.f32.mrb[14].mxu0 }
 0x3a0   :  { %v842_v48 = vpop.f32.mrb[15].mxu0 }
 0x3a1   :  { %v843_v49 = vadd.f32 %v842_v48, %v841_v47 }
 0x3a3   :  { %v612_v50 = vsel %vm611_vm5, %v843_v49, 0.0 }
 0x3a4   :  { %v613_v51 = vrot.slane %v612_v50, 4 }
 0x3a6   :  { %v614_v52 = vadd.f32 %v613_v51, %v612_v50 }
 0x3a8   :  { %v615_v53 = vrot.slane %v614_v52, 2 }
 0x3aa   :  { %v616_v54 = vadd.f32 %v615_v53, %v614_v52 }
 0x3ac   :  { %v617_v55 = vrot.slane %v616_v54, 1 }
 0x3ae   :  { %v618_v56 = vadd.f32 %v617_v55, %v616_v54 }
 0x3b0   :  { %v620_v57 = vmul.f32 0.5, %v618_v56 }
 0x3b2   :  { %v621_v58 = vsub.f32 %v843_v49, %v620_v57 }
 0x3b4   :  { %v622_v59 = vmul.f32 %v621_v58, %v621_v58 }
 0x3b6   :  { %v623_v60 = vsel %vm611_vm5, %v622_v59, 0.0 }
 0x3b7   :  { %v624_v61 = vrot.slane %v623_v60, 4 }
 0x3b9   :  { %v625_v62 = vadd.f32 %v624_v61, %v623_v60 }
 0x3bb   :  { %v626_v3 = vrot.slane %v625_v62, 2 }
 0x3bd   :  { %v627_v63 = vadd.f32 %v626_v3, %v625_v62 }
 0x3bf   :  { %v628_v0 = vrot.slane %v627_v63, 1 }
 0x3c1   :  { %v629_v1 = vadd.f32 %v628_v0, %v627_v63 }
 0x3c3   :  { %v630_v2 = vmul.f32 0.5, %v629_v1 }
 0x3c5   :  { %v631_v4 = vadd.f32 1e-05, %v630_v2 }
 0x3c7   :  { %1019 = vrsqrt.f32 %v631_v4 }
 0x3d1   :  { %v1020_v5 = vpop.eup %1019 }
 0x3d2   :  { %v633_v6 = vmul.f32 %v1020_v5, %v621_v58 }
 0x3d4   :  { %vm634_vm6 = vcmp.ge.f32.partialorder %v633_v6, 0.0  ;;  %v635_v7 = vmul.f32 0.2, %v633_v6 }
 0x3d6   :  { %v636_v8 = vsel %vm634_vm6, %v633_v6, %v635_v7 }
 0x3d7   :  { %911 = vmatmul.mubr.msk.f32.vlgmr.msra.gmra.mrb[14].mxu1 %vm648_vm7, %v636_v8 }
 0x4aa   :  { %v718_v10 = vpop.f32.mrb[14].mxu1 }
 0x4ab   :  { %v719_v11 = vadd.f32 %v731_v9, %v718_v10  ;;  %v912_v12 = vpop.f32.mrb[15].mxu1 }
 0x4ad   :  { %vm722_vm8 = vcmp.ge.f32.partialorder %v719_v11, 0.0  ;;  %v723_v13 = vmul.f32 0.2, %v719_v11 }
 0x4af   :  { %v724_v14 = vsel %vm722_vm8, %v719_v11, %v723_v13 }
 0x4b0   :  { %725 = vst [vmem:[%s1429_s7] sm:$0xff] %v724_v14 }

</bundles_post_ra>
